<compile_context>
chip_gen: v7x
topology: tpu7x:2x2x1
jax: 0.10.0
libtpu: 0.0.40
codegen_flags: <defaults>
</compile_context>

<pallas_src>
import jax
import jax.numpy as jnp
from jax.experimental import pallas as pl
from jax.experimental.pallas import tpu as pltpu


def _round_up(x, m):
    return ((x + m - 1) // m) * m


def _make_head_bce_kernel(tb, n_valid_rows, n_valid_cols,
                          needs_row_mask, needs_col_mask):
    def kernel(x_ref, w_ref, b_ref, y_ref, probs_ref, psum_ref):
        i = pl.program_id(0)
        last = pl.num_programs(0) - 1

        # Single fused affine map (fc1∘fc2∘fc3 folded outside the kernel):
        # bf16 operands, f32 accumulation on the MXU.
        z = jnp.dot(x_ref[...], w_ref[...], preferred_element_type=jnp.float32)
        z = z + b_ref[...]

        # sigmoid(z) is the module's `output`.
        probs_ref[...] = jax.nn.sigmoid(z).astype(probs_ref.dtype)

        # BCE-with-logits, canonical form:
        #   per_elem = max(z, 0) - y*z + log1p(exp(-|z|))
        # Clipping z to [-100, 100] reproduces torch.nn.BCELoss's -100 clamp on
        # the log terms (the two only differ for |z| > 100).
        y = y_ref[...].astype(jnp.float32)
        zc = jnp.clip(z, -100.0, 100.0)
        per_elem = (jnp.maximum(zc, 0.0) - y * zc
                    + jnp.log1p(jnp.exp(-jnp.abs(zc))))

        if needs_col_mask:
            # Zero out padded label columns (L padded to a lane multiple).
            col = jax.lax.broadcasted_iota(jnp.int32, per_elem.shape, 1)
            per_elem = jnp.where(col < n_valid_cols, per_elem, 0.0)

        def write_sum(vals):
            # Lane-dense (1, 128) store; the wrapper reads lane 0 of each row.
            psum_ref[...] = jnp.broadcast_to(jnp.sum(vals), psum_ref.shape)

        if needs_row_mask:
            # Only the last tile can contain out-of-range batch rows; select
            # (not multiply) so garbage/NaN rows can't poison the sum.
            @pl.when(i == last)
            def _():
                row = i * tb + jax.lax.broadcasted_iota(
                    jnp.int32, per_elem.shape, 0)
                write_sum(jnp.where(row < n_valid_rows, per_elem, 0.0))

            @pl.when(i != last)
            def _():
                write_sum(per_elem)
        else:
            write_sum(per_elem)

    return kernel


def fold_head_params(w1, b1, w2, b2, w3, b3):
    """Fold the activation-free fc1->fc2->fc3 chain into one affine map.

    For static weights (inference) call this once and cache the result; the
    fold costs ~2*H^3 FLOPs which dwarfs the kernel at small batch sizes.
    Weights are expected pre-transposed to [in, out].
    """
    w_fused = (w1 @ w2) @ w3                   # [H, L]
    b_fused = (b1 @ w2 + b2) @ w3 + b3         # [1, L]
    return w_fused.astype(jnp.bfloat16), b_fused.astype(jnp.float32)


def classifier_head_forward_folded(pooled, w_fused_bf16, b_fused_f32,
                                   tags_labels, *, block_b=512,
                                   probs_dtype=jnp.bfloat16):
    """fc-chain (pre-folded) -> sigmoid -> BCELoss(mean) in one Pallas kernel.

    Returns (loss scalar f32, probs [B, L]) matching the module's (loss, output).
    """
    assert block_b % 8 == 0
    B, H = pooled.shape
    L = w_fused_bf16.shape[1]

    # Lane-dense output: pad the class dim to a multiple of 128 if needed.
    L_pad = _round_up(L, 128)
    needs_col_mask = L_pad != L

    x_bf = pooled.astype(jnp.bfloat16)
    y_bf = tags_labels.astype(jnp.bfloat16)     # 0/1 multi-hot is exact in bf16
    w_bf = w_fused_bf16.astype(jnp.bfloat16)
    b_f32 = b_fused_f32.astype(jnp.float32)

    if needs_col_mask:
        w_bf = jnp.pad(w_bf, ((0, 0), (0, L_pad - L)))
        b_f32 = jnp.pad(b_f32, ((0, 0), (0, L_pad - L)))
        y_bf = jnp.pad(y_bf, ((0, 0), (0, L_pad - L)))

    # Batch tiling: no padding / slicing of the batch dim. OOB output rows of
    # a partial last tile are dropped by Pallas; OOB input rows are masked
    # (select) out of the loss inside the kernel.
    if B <= block_b:
        tb = B                      # single tile; full-dim block is always legal
    else:
        tb = block_b
    num_tiles = pl.cdiv(B, tb)
    needs_row_mask = (B % tb) != 0

    kernel = _make_head_bce_kernel(tb, B, L, needs_row_mask, needs_col_mask)

    probs_bytes = jnp.dtype(probs_dtype).itemsize
    vmem_need = 2 * (tb * H * 2            # x tile (bf16, double-buffered)
                     + tb * L_pad * 2      # labels tile (bf16)
                     + tb * L_pad * probs_bytes
                     + H * L_pad * 2       # resident fused weight (bf16)
                     + L_pad * 4           # fused bias (f32)
                     + 128 * 4)            # per-tile partial sum
    vmem_limit = min(max(vmem_need + (4 << 20), 32 << 20), 64 << 20)

    probs, psums = pl.pallas_call(
        kernel,
        out_shape=(
            jax.ShapeDtypeStruct((B, L_pad), probs_dtype),
            jax.ShapeDtypeStruct((num_tiles, 128), jnp.float32),
        ),
        grid=(num_tiles,),
        in_specs=[
            pl.BlockSpec((tb, H), lambda i: (i, 0)),        # pooled tile
            pl.BlockSpec((H, L_pad), lambda i: (0, 0)),     # fused weight (resident)
            pl.BlockSpec((1, L_pad), lambda i: (0, 0)),     # fused bias (resident)
            pl.BlockSpec((tb, L_pad), lambda i: (i, 0)),    # labels tile
        ],
        out_specs=(
            pl.BlockSpec((tb, L_pad), lambda i: (i, 0)),    # probs tile
            pl.BlockSpec((1, 128), lambda i: (i, 0)),       # per-tile loss partial
        ),
        compiler_params=pltpu.CompilerParams(
            dimension_semantics=("parallel",),              # megacore-shardable
            vmem_limit_bytes=vmem_limit),
    )(x_bf, w_bf, b_f32, y_bf)

    loss = jnp.sum(psums[:, 0]) / jnp.float32(B * L)
    if needs_col_mask:
        probs = probs[:, :L]
    return loss, probs


def classifier_head_forward(pooled, w1, b1, w2, b2, w3, b3, tags_labels, *,
                            block_b=512, probs_dtype=jnp.bfloat16):
    """fc1 -> fc2 -> fc3 -> sigmoid -> BCELoss(mean), fused in one kernel.

    pooled: [B, H]; w1,w2: [H, H]; w3: [H, L] (all pre-transposed to [in,out]);
    b*: [1, *]; tags_labels: [B, L] multi-hot in [0, 1].
    """
    w_bf, b_f32 = fold_head_params(w1, b1, w2, b2, w3, b3)
    return classifier_head_forward_folded(
        pooled, w_bf, b_f32, tags_labels,
        block_b=block_b, probs_dtype=probs_dtype)


def _reference(pooled, w1, b1, w2, b2, w3, b3, y):
    # Pure-f32 reference matching the PyTorch module (unfolded chain + BCELoss).
    h = pooled @ w1 + b1
    h = h @ w2 + b2
    z = h @ w3 + b3
    p = jax.nn.sigmoid(z)
    lp = jnp.maximum(jnp.log(p), -100.0)
    l1p = jnp.maximum(jnp.log(1.0 - p), -100.0)
    loss = jnp.mean(-(y * lp + (1.0 - y) * l1p))
    return loss, p


if __name__ == "__main__":
    # Small shapes consistent with the module (hidden_size defaults to 768 in
    # PyTorch; use hidden=256 and tags_num_classes=128 for a quick test, both
    # multiples of the TPU lane width).
    B, H, L = 8, 256, 128

    key = jax.random.PRNGKey(0)
    k_x, k_w1, k_b1, k_w2, k_b2, k_w3, k_b3, k_y = jax.random.split(key, 8)

    pooled = jax.random.normal(k_x, (B, H), dtype=jnp.float32)

    # Kaiming-uniform-like init (scale 1/sqrt(fan_in)); weights stored
    # pre-transposed as [in, out] for x @ W.
    s_h = 1.0 / jnp.sqrt(jnp.float32(H))
    w1 = jax.random.uniform(k_w1, (H, H), jnp.float32, -s_h, s_h)
    b1 = jax.random.uniform(k_b1, (1, H), jnp.float32, -s_h, s_h)
    w2 = jax.random.uniform(k_w2, (H, H), jnp.float32, -s_h, s_h)
    b2 = jax.random.uniform(k_b2, (1, H), jnp.float32, -s_h, s_h)
    w3 = jax.random.uniform(k_w3, (H, L), jnp.float32, -s_h, s_h)
    b3 = jax.random.uniform(k_b3, (1, L), jnp.float32, -s_h, s_h)

    tags_labels = (jax.random.uniform(k_y, (B, L)) > 0.5).astype(jnp.float32)

    loss, probs = classifier_head_forward(pooled, w1, b1, w2, b2, w3, b3,
                                          tags_labels)
    jax.block_until_ready((loss, probs))

    ref_loss, ref_probs = _reference(pooled, w1, b1, w2, b2, w3, b3, tags_labels)

    # bf16 matmul operands and bf16 probs output -> relaxed tolerances.
    assert probs.shape == (B, L)
    assert jnp.allclose(probs.astype(jnp.float32), ref_probs,
                        atol=2e-2, rtol=2e-2)
    assert jnp.allclose(loss, ref_loss, atol=5e-3, rtol=5e-3)

    print("KERNEL_OK")
</pallas_src>

<mosaic_0001>
module attributes {stable_mosaic.version = 11 : i64} {
  func.func @kernel(%arg0: i32, %arg1: memref<8x256xbf16, #tpu.memory_space<vmem>>, %arg2: memref<256x128xbf16, #tpu.memory_space<vmem>>, %arg3: memref<1x128xf32, #tpu.memory_space<vmem>>, %arg4: memref<8x128xbf16, #tpu.memory_space<vmem>>, %arg5: memref<8x128xbf16, #tpu.memory_space<vmem>>, %arg6: memref<1x128xf32, #tpu.memory_space<vmem>>) attributes {dimension_semantics = [#tpu.dimension_semantics<parallel>], iteration_bounds = array<i64: 1>, scalar_prefetch = 0 : i64, scratch_operands = 0 : i64, tpu.core_type = #tpu.core_type<tc>, window_params = [{transform_indices = @transform_0, window_bounds = array<i64: 8, 256>}, {pipeline_mode = #tpu.pipeline_mode<synchronous>, transform_indices = @transform_1, window_bounds = array<i64: 256, 128>}, {pipeline_mode = #tpu.pipeline_mode<synchronous>, transform_indices = @transform_2, window_bounds = array<i64: 1, 128>}, {transform_indices = @transform_3, window_bounds = array<i64: 8, 128>}, {transform_indices = @transform_4, window_bounds = array<i64: 8, 128>}, {transform_indices = @transform_5, window_bounds = array<i64: 1, 128>}]} {
    %c0 = arith.constant 0 : index
    %c0_0 = arith.constant 0 : index
    %0 = vector.load %arg1[%c0, %c0_0] : memref<8x256xbf16, #tpu.memory_space<vmem>>, vector<8x256xbf16>
    %c0_1 = arith.constant 0 : index
    %c0_2 = arith.constant 0 : index
    %1 = vector.load %arg2[%c0_1, %c0_2] : memref<256x128xbf16, #tpu.memory_space<vmem>>, vector<256x128xbf16>
    %cst = arith.constant dense<0.000000e+00> : vector<8x128xf32>
    %2 = tpu.matmul %0, %1, %cst {dimension_numbers = #tpu.dot_dimension_numbers<[1], [0], [0], [1], [0, 0, 1, 1], [], []>} : vector<8x256xbf16>, vector<256x128xbf16>, vector<8x128xf32> -> vector<8x128xf32>
    %c0_3 = arith.constant 0 : index
    %c0_4 = arith.constant 0 : index
    %3 = vector.load %arg3[%c0_3, %c0_4] : memref<1x128xf32, #tpu.memory_space<vmem>>, vector<1x128xf32>
    %4 = vector.broadcast %3 : vector<1x128xf32> to vector<8x128xf32>
    %5 = arith.addf %2, %4 : vector<8x128xf32>
    %6 = arith.negf %5 : vector<8x128xf32>
    %7 = math.exp %6 : vector<8x128xf32>
    %cst_5 = arith.constant 1.000000e+00 : f32
    %8 = vector.broadcast %cst_5 : f32 to vector<8x128xf32>
    %9 = arith.addf %8, %7 : vector<8x128xf32>
    %10 = arith.divf %8, %9 : vector<8x128xf32>
    %11 = arith.truncf %10 : vector<8x128xf32> to vector<8x128xbf16>
    %c0_6 = arith.constant 0 : index
    %c0_7 = arith.constant 0 : index
    %12 = vector.load %arg5[%c0_6, %c0_7] : memref<8x128xbf16, #tpu.memory_space<vmem>>, vector<8x128xbf16>
    tpu.vector_store %arg5[%c0_6, %c0_7], %11 {strides = array<i32>} : memref<8x128xbf16, #tpu.memory_space<vmem>>, vector<8x128xbf16>,
    %c0_8 = arith.constant 0 : index
    %c0_9 = arith.constant 0 : index
    %13 = vector.load %arg4[%c0_8, %c0_9] : memref<8x128xbf16, #tpu.memory_space<vmem>>, vector<8x128xbf16>
    %14 = arith.extf %13 : vector<8x128xbf16> to vector<8x128xf32>
    %cst_10 = arith.constant -1.000000e+02 : f32
    %cst_11 = arith.constant 1.000000e+02 : f32
    %15 = vector.broadcast %cst_10 : f32 to vector<8x128xf32>
    %16 = arith.maximumf %15, %5 : vector<8x128xf32>
    %17 = vector.broadcast %cst_11 : f32 to vector<8x128xf32>
    %18 = arith.minimumf %17, %16 : vector<8x128xf32>
    %cst_12 = arith.constant 0.000000e+00 : f32
    %19 = vector.broadcast %cst_12 : f32 to vector<8x128xf32>
    %20 = arith.maximumf %18, %19 : vector<8x128xf32>
    %21 = arith.mulf %14, %18 : vector<8x128xf32>
    %22 = arith.subf %20, %21 : vector<8x128xf32>
    %23 = math.absf %18 : vector<8x128xf32>
    %cst_13 = arith.constant 0.000000e+00 : f32
    %24 = vector.broadcast %cst_13 : f32 to vector<8x128xf32>
    %25 = arith.subf %24, %23 : vector<8x128xf32>
    %26 = math.exp %25 : vector<8x128xf32>
    %27 = math.log1p %26 : vector<8x128xf32>
    %28 = arith.addf %22, %27 : vector<8x128xf32>
    %29 = vector.shape_cast %28 : vector<8x128xf32> to vector<1x8x128xf32>
    %cst_14 = arith.constant dense<0.000000e+00> : vector<1xf32>
    %30 = vector.multi_reduction <add>, %29, %cst_14 [1, 2] : vector<1x8x128xf32> to vector<1xf32>
    %31 = vector.shape_cast %30 : vector<1xf32> to vector<1x1x1xf32>
    %32 = vector.extract %31[0, 0, 0] : f32 from vector<1x1x1xf32>
    %33 = vector.broadcast %32 : f32 to vector<1x128xf32>
    %c0_15 = arith.constant 0 : index
    %c0_16 = arith.constant 0 : index
    %34 = vector.load %arg6[%c0_15, %c0_16] : memref<1x128xf32, #tpu.memory_space<vmem>>, vector<1x128xf32>
    tpu.vector_store %arg6[%c0_15, %c0_16], %33 {strides = array<i32>} : memref<1x128xf32, #tpu.memory_space<vmem>>, vector<1x128xf32>,
    return
  }
  func.func @transform_0(%arg0: i32) -> (i32, i32) {
    %c0_i32 = arith.constant 0 : i32
    %c0_i32_0 = arith.constant 0 : i32
    return %arg0, %c0_i32 : i32, i32
  }
  func.func @transform_1(%arg0: i32) -> (i32, i32) {
    %c0_i32 = arith.constant 0 : i32
    %c0_i32_0 = arith.constant 0 : i32
    %c0_i32_1 = arith.constant 0 : i32
    return %c0_i32, %c0_i32_0 : i32, i32
  }
  func.func @transform_2(%arg0: i32) -> (i32, i32) {
    %c0_i32 = arith.constant 0 : i32
    %c0_i32_0 = arith.constant 0 : i32
    %c0_i32_1 = arith.constant 0 : i32
    return %c0_i32, %c0_i32_0 : i32, i32
  }
  func.func @transform_3(%arg0: i32) -> (i32, i32) {
    %c0_i32 = arith.constant 0 : i32
    %c0_i32_0 = arith.constant 0 : i32
    return %arg0, %c0_i32 : i32, i32
  }
  func.func @transform_4(%arg0: i32) -> (i32, i32) {
    %c0_i32 = arith.constant 0 : i32
    %c0_i32_0 = arith.constant 0 : i32
    return %arg0, %c0_i32 : i32, i32
  }
  func.func @transform_5(%arg0: i32) -> (i32, i32) {
    %c0_i32 = arith.constant 0 : i32
    %c0_i32_0 = arith.constant 0 : i32
    return %arg0, %c0_i32 : i32, i32
  }
}

</mosaic_0001>

<bundles_post_ra>
// kernel: tpu_custom_call.1
= control target key start
LH: loop header
LB: loop body
LE: loop exit
PB: predicated region body
PF: predicated region fallthrough
CT: control target
= control target key end

     0   :  { %11 = vsyncpa [#allocation3], 0  ;;  %s571_s0 = inlined_call_operand.hbm [shape: bf16[8,256], index: 0, kind: input, shape index: {}]   ;;  %s572_s1 = inlined_call_operand.hbm [shape: bf16[256,128], index: 1, kind: input, shape index: {}]   ;;  %s573_s2 = inlined_call_operand.vmem [shape: f32[1,128], index: 2, kind: input, shape index: {}]   ;;  %s574_s3 = inlined_call_operand.vmem [shape: bf16[8,128], index: 3, kind: input, shape index: {}]   ;;  %s575_s4 = inlined_call_operand.hbm [shape: bf16[8,128], index: 4, kind: output, shape index: {0}]   ;;  %s576_s5 = inlined_call_operand.hbm [shape: f32[1,128], index: 5, kind: output, shape index: {1}]  }
   0x1   :  { %12 = vsyncpa [#allocation6], 0 }
   0x2   :  { %13 = vsyncpa [#allocation4], 0 }
   0x3   :  { %14 = vsyncpa [#allocation9], 0  ;;  %s474_s18 = smov [#allocation2]   ;;  %s475_s20 = smov [#allocation5]  }
   0x4   :  { %s21_s19 = sshll.u32 %s474_s18, 4  ;;  %s30_s21 = sshll.u32 %s475_s20, 4  ;;  %s22_s19 = int_to_ptr.vmem [resolvable:$true] %s21_s19  ;;  %s510_s21 = int_to_ptr.vmem [resolvable:$true] %s30_s21 }
   0x5   :  { %s378_s24 = scalar_lea.hbm %s571_s0, 128 }
   0x6   :  { %p379_p0 = scmp.ne.s32.totalorder %s571_s0, %s378_s24  ;;  %p382_p1 = scmp.lt.u32.totalorder %s378_s24, %s571_s0 }
   0x8   :  { %p384_p2 = pnand %p382_p1, %p379_p0 }
   0xa   :  { %387 = shalt.err (!%p384_p2)
}
   0xb   :  { %s388_s29 = scalar_lea.vmem %s22_s19, 128  ;;  %p393_p4 = scmp.lt.s32.totalorder %s22_s19, %s22_s19 }
   0xc   :  { %p389_p3 = scmp.ne.s32.totalorder %s22_s19, %s388_s29  ;;  %p394_p5 = scmp.lt.s32.totalorder %s388_s29, %s388_s29 }
   0xe   :  { %p395_p6 = por %p394_p5, %p393_p4 }
  0x10   :  { %p396_p7 = pnand %p395_p6, %p389_p3 }
  0x12   :  { %399 = shalt.err (!%p396_p7)
}
  0x13   :  { %24 = dma.hbm_to_vmem [thread:$0]  %s571_s0, 128, %s22_s19, [#allocation3]  }
  0x14   :  { %s400_s9 = scalar_lea.hbm %s572_s1, 2048 }
  0x15   :  { %p401_p8 = scmp.ne.s32.totalorder %s572_s1, %s400_s9  ;;  %p404_p9 = scmp.lt.u32.totalorder %s400_s9, %s572_s1 }
  0x17   :  { %p406_p10 = pnand %p404_p9, %p401_p8 }
  0x19   :  { %409 = shalt.err (!%p406_p10)
}
  0x1a   :  { %s410_s14 = scalar_lea.vmem %s510_s21, 2048  ;;  %p415_p12 = scmp.lt.s32.totalorder %s510_s21, %s510_s21 }
  0x1b   :  { %p411_p11 = scmp.ne.s32.totalorder %s510_s21, %s410_s14  ;;  %p416_p13 = scmp.lt.s32.totalorder %s410_s14, %s410_s14 }
  0x1d   :  { %p417_p0 = por %p416_p13, %p415_p12 }
  0x1f   :  { %p418_p1 = pnand %p417_p0, %p411_p11 }
  0x21   :  { %421 = shalt.err (!%p418_p1)
}
  0x22   :  { %s476_s0 = smov 64   ;;  %s477_s15 = smov 4  }
  0x23   :  { %36 = dma.hbm_to_vmem [thread:$0]  %s572_s1, 2048, %s510_s21, [#allocation6], %s476_s0, %s476_s0, %s477_s15  }
  0x24   :  { %466 = dma.done.wait [#allocation3], 128  }
  0x25   :  { %467 = vsyncadd [#allocation3], 4294967168 }
  0x26   :  { %468 = dma.done.wait [#allocation6], 2048  }
  0x27   :  { %469 = vsyncadd [#allocation6], 4294965248  ;;  %v352_v0 = vld [vmem:[#allocation5 + $0x40] sm:$0xff]   ;;  %v354_v2 = vld [vmem:[#allocation5 + $0x48] sm:$0xff]   ;;  %s478_s20 = smov [#allocation7]  }
  0x28   :  { %v353_v1 = vld [vmem:[#allocation5] sm:$0xff]   ;;  %322 = vmatprep.subr.bf16.mxu0 %v352_v0  ;;  %v355_v3 = vld [vmem:[#allocation5 + $0x8] sm:$0xff]   ;;  %v356_v4 = vld [vmem:[#allocation5 + $0x50] sm:$0xff]   ;;  %s277_s21 = sshll.u32 %s478_s20, 4  ;;  %s278_s21 = int_to_ptr.vmem [resolvable:$true] %s277_s21 }
  0x29   :  { %323 = vmatpush3.bf16.msra.mxu0 %v353_v1  ;;  %v357_v5 = vld [vmem:[#allocation5 + $0x10] sm:$0xff]   ;;  %v358_v6 = vld [vmem:[#allocation5 + $0x58] sm:$0xff]   ;;  %v360_v8 = vld [vmem:[#allocation5 + $0x60] sm:$0xff]   ;;  %p427_p3 = scmp.lt.s32.totalorder %s278_s21, %s278_s21 }
  0x2a   :  { %324 = vmatprep.subr.bf16.mxu0 %v354_v2  ;;  %v359_v7 = vld [vmem:[#allocation5 + $0x18] sm:$0xff]   ;;  %v361_v9 = vld [vmem:[#allocation5 + $0x20] sm:$0xff]   ;;  %v362_v10 = vld [vmem:[#allocation5 + $0x68] sm:$0xff]  }
  0x2b   :  { %v48_v11 = vld [vmem:[#allocation2] sm:$0xff]  ;;  %v363_v13 = vld [vmem:[#allocation5 + $0x28] sm:$0xff]   ;;  %v364_v14 = vld [vmem:[#allocation5 + $0x70] sm:$0xff]  }
  0x2c   :  { %v303_v12 = vcombine.high %v48_v11, %v48_v11  ;;  %v365_v15 = vld [vmem:[#allocation5 + $0x30] sm:$0xff]   ;;  %v366_v16 = vld [vmem:[#allocation5 + $0x78] sm:$0xff]   ;;  %v302_v18 = vcombine.low %v48_v11, %v48_v11 }
  0x2d   :  { %325 = vmatpush3.bf16.msra.mxu0 %v355_v3  ;;  %v367_v17 = vld [vmem:[#allocation5 + $0x38] sm:$0xff]  }
  0x2e   :  { %326 = vmatprep.subr.bf16.mxu0 %v356_v4  ;;  %223 = vmatprep.mubr.bf16.mxu0 %v303_v12  ;;  %v301_v20 = vld [vmem:[%s573_s2] ss:$0 sm:$0xff] }
  0x2f   :  { %v239_v35 = vld [vmem:[%s574_s3] sm:$0xf]  ;;  %s422_s3 = scalar_lea.vmem %s278_s21, 64 }
  0x30   :  { %v240_v38 = vunpack.c.l.bf16 %v239_v35  ;;  %p423_p2 = scmp.ne.s32.totalorder %s278_s21, %s422_s3  ;;  %p428_p4 = scmp.lt.s32.totalorder %s422_s3, %s422_s3 }
  0x31   :  { %327 = vmatpush3.bf16.msra.mxu0 %v357_v5 }
  0x32   :  { %328 = vmatprep.subr.bf16.mxu0 %v358_v6  ;;  %p429_p5 = por %p428_p4, %p427_p3 }
  0x34   :  { %p430_p6 = pnand %p429_p5, %p423_p2 }
  0x35   :  { %329 = vmatpush3.bf16.msra.mxu0 %v359_v7 }
  0x36   :  { %330 = vmatprep.subr.bf16.mxu0 %v360_v8 }
  0x39   :  { %331 = vmatpush3.bf16.msra.mxu0 %v361_v9 }
  0x3a   :  { %332 = vmatprep.subr.bf16.mxu0 %v362_v10 }
  0x3d   :  { %333 = vmatpush3.bf16.msra.mxu0 %v363_v13 }
  0x3e   :  { %334 = vmatprep.subr.bf16.mxu0 %v364_v14 }
  0x41   :  { %335 = vmatpush3.bf16.msra.mxu0 %v365_v15 }
  0x42   :  { %336 = vmatprep.subr.bf16.mxu0 %v366_v16 }
  0x45   :  { %337 = vmatpush3.bf16.msra.mxu0 %v367_v17 }
  0x48   :  { %224 = vmatmul.mubr.bf16.vlgmr.msra.gmra.mrb[0].mxu0 %v302_v18 }
 0x11b   :  { %v338_v19 = vpop.f32.mrb[0].mxu0 }
 0x11c   :  { %v339_v21 = vpop.f32.mrb[1].mxu0 }
 0x11d   :  { %v340_v22 = vadd.f32 %v339_v21, %v338_v19  ;;  %v341_v23 = vpop.f32.mrb[2].mxu0 }
 0x11e   :  { %v342_v24 = vpop.f32.mrb[3].mxu0 }
 0x11f   :  { %v226_v25 = vadd.f32 %v340_v22, %v301_v20 }
 0x121   :  { %v320_v26 = vmul.f32 -1.442695, %v226_v25  ;;  %v321_v27 = vclamps-f32 %v226_v25, 100.0 }
 0x123   :  { %370 = vpow2.f32 %v320_v26  ;;  %v246_v28 = vand.u32 2147483647, %v321_v27  ;;  %v243_v41 = vmax.f32 %v321_v27, 0.0  ;;  %v244_v42 = vmul.f32 %v321_v27, %v240_v38 }
 0x125   :  { %v247_v29 = vsub.f32 0.0, %v246_v28  ;;  %v245_v47 = vsub.f32 %v243_v41, %v244_v42 }
 0x127   :  { %v248_v30 = vmul.f32 1.442695, %v247_v29 }
 0x129   :  { %372 = vpow2.f32 %v248_v30 }
 0x12d   :  { %v371_v31 = vpop.eup %370 }
 0x12e   :  { %v234_v32 = vadd.f32 1.0, %v371_v31 }
 0x130   :  { %374 = vrcp.f32 %v234_v32 }
 0x133   :  { %v373_v33 = vpop.eup %372 }
 0x134   :  { %v250_v34 = vadd.f32 1.0, %v373_v33  ;;  %v253_v36 = vmul.f32 -0.5, %v373_v33  ;;  %v256_v43 = vand.u32 2147483647, %v373_v33 }
 0x136   :  { %376 = vlog2.f32 %v250_v34  ;;  %v254_v40 = vadd.f32 1.0, %v253_v36  ;;  %vm257_vm0 = vcmp.lt.f32.partialorder %v256_v43, 0.0004427343 }
 0x138   :  { %v255_v46 = vmul.f32 %v373_v33, %v254_v40 }
 0x13a   :  { %v375_v37 = vpop.eup %374 }
 0x13b   :  { %v237_v39 = vpack.c.bf16 %v375_v37, %v375_v37 }
 0x13d   :  { %238 = vst [vmem:[#allocation7] sm:$0xf] %v237_v39 }
 0x140   :  { %v377_v44 = vpop.eup %376 }
 0x141   :  { %v252_v45 = vmul.f32 0.6931472, %v377_v44 }
 0x143   :  { %v258_v48 = vsel %vm257_vm0, %v255_v46, %v252_v45 }
 0x144   :  { %v259_v49 = vadd.f32 %v258_v48, %v245_v47 }
 0x146   :  { %260 = vadd.xlane.f32.xlu0 %v259_v49 }
 0x147   :  { %433 = shalt.err (!%p430_p6)
}
 0x148   :  { %s434_s24 = scalar_lea.hbm %s575_s4, 64 }
 0x149   :  { %p435_p7 = scmp.ne.s32.totalorder %s575_s4, %s434_s24  ;;  %p438_p8 = scmp.lt.u32.totalorder %s434_s24, %s575_s4 }
 0x14b   :  { %p440_p9 = pnand %p438_p8, %p435_p7 }
 0x14d   :  { %443 = shalt.err (!%p440_p9)
}
 0x14e   :  { %280 = dma.vmem_to_hbm [thread:$0]  %s278_s21, 64, %s575_s4, [#allocation4]  }
 0x14f   :  { %s479_s6 = smov [#allocation8]  }
 0x150   :  { %s287_s7 = sshll.u32 %s479_s6, 4  ;;  %s288_s7 = int_to_ptr.vmem [resolvable:$true] %s287_s7 }
 0x151   :  { %s444_s9 = scalar_lea.vmem %s288_s7, 16  ;;  %s448_s10 = scalar_lea.vmem %s288_s7, 32 }
 0x152   :  { %p445_p10 = scmp.ne.s32.totalorder %s288_s7, %s444_s9  ;;  %p449_p11 = scmp.lt.s32.totalorder %s288_s7, %s288_s7 }
 0x153   :  { %p450_p12 = scmp.lt.s32.totalorder %s448_s10, %s444_s9 }
 0x155   :  { %p451_p13 = por %p450_p12, %p449_p11 }
 0x157   :  { %p452_p0 = pnand %p451_p13, %p445_p10 }
 0x1d3   :  { %v261_v50 = vpop.xlane.xlu0 %260 }
 0x1d4   :  { %v262_v51 = vrot.slane %v261_v50, 4 }
 0x1d6   :  { %v263_v52 = vadd.f32 %v262_v51, %v261_v50 }
 0x1d8   :  { %v264_v53 = vrot.slane %v263_v52, 2 }
 0x1da   :  { %v265_v54 = vadd.f32 %v264_v53, %v263_v52 }
 0x1dc   :  { %v266_v55 = vrot.slane %v265_v54, 1 }
 0x1de   :  { %v267_v56 = vadd.f32 %v266_v55, %v265_v54 }
 0x1e0   :  { %344 = vpush %v267_v56 }
 0x211   :  { %s345_s8 = spop %344 }
 0x212   :  { %v269_v57 = vstv %s345_s8 }
 0x213   :  { %270 = vst [vmem:[#allocation8] sm:$0x1] %v269_v57 }
 0x214   :  { %455 = shalt.err (!%p452_p0)
}
 0x215   :  { %s456_s12 = scalar_lea.hbm %s576_s5, 16 }
 0x216   :  { %p457_p1 = scmp.ne.s32.totalorder %s576_s5, %s456_s12  ;;  %p460_p2 = scmp.lt.u32.totalorder %s456_s12, %s576_s5 }
 0x218   :  { %p462_p3 = pnand %p460_p2, %p457_p1 }
 0x21a   :  { %465 = shalt.err (!%p462_p3)
}
 0x21b   :  { %290 = dma.vmem_to_hbm [thread:$0]  %s288_s7, 16, %s576_s5, [#allocation9]  }
 0x21c   :  { %470 = dma.done.wait [#allocation4], 64  }
 0x21d   :  { %471 = vsyncadd [#allocation4], 4294967232 }
 0x21e   :  { %472 = dma.done.wait [#allocation9], 16  }
 0x21f   :  { %473 = vsyncadd [#allocation9], 4294967280 }
 0x220   :  { %297 = vsyncpa [#allocation3], 1 }
 0x221   :  { %298 = vsyncpa [#allocation6], 1 }
 0x222   :  { %299 = vsyncpa [#allocation4], 1 }
 0x223   :  { %300 = vsyncpa [#allocation9], 1 }

</bundles_post_ra>
